<compile_context>
chip_gen: v7x
topology: tpu7x:2x2x1
jax: 0.10.0
libtpu: 0.0.40
codegen_flags: <defaults>
</compile_context>

<pallas_src>
import functools
import math

import numpy as np
import jax
import jax.numpy as jnp
from jax.experimental import pallas as pl
from jax.experimental.pallas import tpu as pltpu


# ----------------------------------------------------------------------------
# Host-side (numpy) motion-kernel construction + tap pruning
# ----------------------------------------------------------------------------
def _rodrigues_np(angle_axis_rad):
    """Angle-axis -> 3x3 rotation matrix (Rodrigues, small-angle Taylor branch)."""
    aa = np.asarray(angle_axis_rad, dtype=np.float64)
    theta2 = float(aa @ aa)
    if theta2 > 1e-14:
        theta = math.sqrt(theta2)
        wx, wy, wz = (aa / theta).tolist()
        ct, st = math.cos(theta), math.sin(theta)
        omc = 1.0 - ct
        return np.array(
            [[ct + wx * wx * omc, wx * wy * omc - wz * st, wy * st + wx * wz * omc],
             [wz * st + wx * wy * omc, ct + wy * wy * omc, -wx * st + wy * wz * omc],
             [-wy * st + wx * wz * omc, wx * st + wy * wz * omc, ct + wz * wz * omc]],
            dtype=np.float64)
    rx, ry, rz = aa.tolist()
    return np.array([[1.0, -rz, ry],
                     [rz, 1.0, -rx],
                     [-ry, rx, 1.0]], dtype=np.float64)


def get_motion_kernel3d(kernel_size, angle_deg, direction):
    """Normalized (K, K, K) motion-blur kernel (mode='nearest'), host numpy."""
    K = int(kernel_size)
    assert K % 2 == 1 and K >= 3
    d = (min(max(float(direction), -1.0), 1.0) + 1.0) / 2.0
    i = np.arange(K, dtype=np.float64)
    line = d + ((1.0 - 2.0 * d) / (K - 1)) * i                      # (K,)

    base = np.zeros((K, K, K), np.float64)
    base[K // 2, K // 2, :] = line                                  # line along W

    # Rotate the cube: nearest sampling, zeros padding.
    # TODO(synk): rotation convention matches an align_corners-style nearest
    # warp; not bit-validated against kornia's warp_affine3d for arbitrary
    # angles.
    R = _rodrigues_np(np.deg2rad(np.asarray(angle_deg, np.float64)))
    c = (K - 1) / 2.0
    zz, yy, xx = np.meshgrid(np.arange(K), np.arange(K), np.arange(K),
                             indexing="ij")
    p_dst = np.stack([xx, yy, zz], axis=-1).astype(np.float64) - c  # (K,K,K,3)
    p_src = p_dst @ R + c                                           # = R^T p + c
    idx = np.rint(p_src).astype(np.int64)
    ix, iy, iz = idx[..., 0], idx[..., 1], idx[..., 2]
    inb = ((ix >= 0) & (ix < K) & (iy >= 0) & (iy < K) & (iz >= 0) & (iz < K))
    ixc = np.clip(ix, 0, K - 1)
    iyc = np.clip(iy, 0, K - 1)
    izc = np.clip(iz, 0, K - 1)
    rot = np.where(inb, base[izc, iyc, ixc], 0.0)

    s = float(rot.sum())
    if s <= 1e-8:
        rot, s = base, float(base.sum())     # degenerate rotation fallback
    return (rot / s).astype(np.float32)


def _group_taps(kernel3d):
    """Nonzero taps grouped by (kh, kw): (((kh, kw), ((kd, wt), ...)), ...)."""
    K = kernel3d.shape[0]
    groups = {}
    n_taps = 0
    for kd in range(K):
        for kh in range(K):
            for kw in range(K):
                wt = float(kernel3d[kd, kh, kw])
                if wt != 0.0:
                    groups.setdefault((kh, kw), []).append((kd, wt))
                    n_taps += 1
    grouped = tuple(sorted((hw, tuple(kds)) for hw, kds in groups.items()))
    return grouped, n_taps


# ----------------------------------------------------------------------------
# Pallas kernel: depthwise 3-D correlation with in-VMEM constant-border halo
# ----------------------------------------------------------------------------
def _motion_conv_kernel(*refs, groups, p, td, h, w, n_d_tiles, use_halo):
    if use_halo:
        x_ref, lo_ref, hi_ref, o_ref, s_ref = refs
    else:
        x_ref, o_ref, s_ref = refs
        lo_ref = hi_ref = None

    t = pl.program_id(1)

    # Constant ('zeros') border built entirely in VMEM: zero the padded
    # scratch, place the unpadded tile in its interior, and (when D is tiled)
    # fill the D halo from the two p-thick neighbour slabs.
    s_ref[...] = jnp.zeros(s_ref.shape, dtype=s_ref.dtype)
    s_ref[:, pl.ds(p, td), pl.ds(p, h), pl.ds(p, w)] = x_ref[...]

    if use_halo:
        @pl.when(t > 0)
        def _():
            s_ref[:, pl.ds(0, p), pl.ds(p, h), pl.ds(p, w)] = lo_ref[...]

        @pl.when(t < n_d_tiles - 1)
        def _():
            s_ref[:, pl.ds(p + td, p), pl.ds(p, h), pl.ds(p, w)] = hi_ref[...]

    # Pruned depthwise correlation.  One shifted slab per unique (kh, kw)
    # (the only offsets needing a sublane/lane relayout); kd offsets within a
    # group are free leading-axis slices of the already-loaded slab.
    acc = None
    for (kh, kw), kds in groups:
        slab = s_ref[:, :, pl.ds(kh, h), pl.ds(kw, w)].astype(jnp.float32)
        for kd, wt in kds:
            term = slab[:, kd:kd + td] * wt
            acc = term if acc is None else acc + term
    o_ref[...] = acc.astype(o_ref.dtype)


# ----------------------------------------------------------------------------
# Tiling / VMEM accounting helpers
# ----------------------------------------------------------------------------
def _round_up(x, m):
    return ((x + m - 1) // m) * m


def _tile_padded_bytes(shape, dtype):
    """Bytes of a VMEM buffer including (8*packing, 128) layout tile padding."""
    itemsize = jnp.dtype(dtype).itemsize
    packing = max(1, 4 // itemsize)
    lead = 1
    for s in shape[:-2]:
        lead *= int(s)
    rows = _round_up(int(shape[-2]), 8 * packing)
    cols = _round_up(int(shape[-1]), 128)
    return lead * rows * cols * itemsize


def _vmem_capacity_bytes():
    try:
        return int(pltpu.get_tpu_info().vmem_capacity_bytes)
    except Exception:
        return 64 << 20        # v7x-safe fallback (v5e/v6e have 128 MiB)


def _choose_tiling(n_vol, d, h, w, p, dtype, budget, target_steps=8):
    """Pick (G volumes/step, TD depth tile) maximizing pipeline steps (capped
    at target_steps) then per-step block size, under the VMEM budget."""

    def vmem_need(g, td, use_halo):
        main = _tile_padded_bytes((g, td, h, w), dtype)          # input block
        out = main                                               # output block
        halo = 2 * _tile_padded_bytes((g, p, h, w), dtype) if use_halo else 0
        scratch = _tile_padded_bytes((g, td + 2 * p, h + 2 * p, w + 2 * p),
                                     dtype)
        acc = _tile_padded_bytes((g, td, h, w), jnp.float32)     # live f32 acc
        return 2 * (main + out + halo) + scratch + acc           # x2: dbl-buf

    td_cands = [d] + [td for td in range(d - 1, 0, -1)
                      if d % td == 0 and td % p == 0]
    g_cands = [g for g in range(1, n_vol + 1) if n_vol % g == 0]

    best = None
    for g in g_cands:
        for td in td_cands:
            n_dt = d // td
            if vmem_need(g, td, n_dt > 1) > budget:
                continue
            steps = (n_vol // g) * n_dt
            score = (min(steps, target_steps), g * td * h * w)
            if best is None or score > best[0]:
                best = (score, g, td)
    if best is None:
        # Nothing fits the budget: smallest depth tile, let vmem_limit absorb.
        # TODO(synk): volumes with huge H*W planes also need an H-tiled halo.
        td = td_cands[-1]
        return 1, td, vmem_need(1, td, d // td > 1)
    _, g, td = best
    return g, td, vmem_need(g, td, d // td > 1)


# ----------------------------------------------------------------------------
# filter3d
# ----------------------------------------------------------------------------
_PAD_MODE = {"constant": "constant", "reflect": "reflect",
             "replicate": "edge", "circular": "wrap"}


def _filter3d_dense_jax(image, kernel3d, border_type="constant"):
    """Plain-JAX dense reference / fallback for non-constant borders."""
    B, C, D, H, W = image.shape
    k_np = np.asarray(kernel3d)
    K = k_np.shape[-1]
    p = K // 2
    xpad = jnp.pad(image, ((0, 0), (0, 0), (p, p), (p, p), (p, p)),
                   mode=_PAD_MODE[border_type])
    out = jnp.zeros(image.shape, jnp.float32)
    for kd in range(K):
        for kh in range(K):
            for kw in range(K):
                out = out + float(k_np[kd, kh, kw]) * \
                    xpad[:, :, kd:kd + D, kh:kh + H, kw:kw + W].astype(jnp.float32)
    return out.astype(image.dtype)


def filter3d_pallas(image, kernel3d, border_type="constant"):
    """Depthwise filter of a [B, C, D, H, W] volume with a static KxKxK kernel."""
    if border_type not in _PAD_MODE:
        raise AssertionError(border_type)
    B, C, D, H, W = image.shape
    K = int(kernel3d.shape[0])
    p = K // 2

    if border_type != "constant":
        # TODO(synk): reflect/replicate/circular halos are not filled in-kernel
        # yet; correct (non-Pallas) dense JAX path is used instead.
        return _filter3d_dense_jax(image, kernel3d, border_type)

    groups, n_taps = _group_taps(kernel3d)

    n_vol = B * C
    x = image.reshape(n_vol, D, H, W)            # free reshape, no HBM copy

    cap = _vmem_capacity_bytes()
    budget = int(cap * 0.55)
    G, TD, need = _choose_tiling(n_vol, D, H, W, p, image.dtype, budget)
    n_dt = D // TD
    use_halo = n_dt > 1
    vmem_limit = int(min(int(cap * 0.9), max(need + (4 << 20), 16 << 20)))

    kern = functools.partial(
        _motion_conv_kernel, groups=groups, p=p, td=TD, h=H, w=W,
        n_d_tiles=n_dt, use_halo=use_halo)

    in_specs = [pl.BlockSpec((G, TD, H, W), lambda v, t: (v, t, 0, 0))]
    args = [x]
    if use_halo:
        r = TD // p                                  # halo blocks are p thick
        n_pblk = D // p
        in_specs.append(pl.BlockSpec(
            (G, p, H, W),
            lambda v, t: (v, jnp.maximum(t * r - 1, 0), 0, 0)))
        in_specs.append(pl.BlockSpec(
            (G, p, H, W),
            lambda v, t: (v, jnp.minimum((t + 1) * r, n_pblk - 1), 0, 0)))
        args += [x, x]

    itemsize = jnp.dtype(image.dtype).itemsize
    cost = pl.CostEstimate(
        flops=2 * n_taps * n_vol * D * H * W,
        transcendentals=0,
        bytes_accessed=2 * n_vol * D * H * W * itemsize)

    out = pl.pallas_call(
        kern,
        out_shape=jax.ShapeDtypeStruct((n_vol, D, H, W), image.dtype),
        grid=(n_vol // G, n_dt),
        in_specs=in_specs,
        out_specs=pl.BlockSpec((G, TD, H, W), lambda v, t: (v, t, 0, 0)),
        scratch_shapes=[pltpu.VMEM((G, TD + 2 * p, H + 2 * p, W + 2 * p),
                                   image.dtype)],
        compiler_params=pltpu.CompilerParams(
            dimension_semantics=("parallel", "parallel"),
            vmem_limit_bytes=vmem_limit),
        cost_estimate=cost,
    )(*args)

    return out.reshape(B, C, D, H, W)


# ----------------------------------------------------------------------------
# Module wrapper (mirrors MotionBlur3D)
# ----------------------------------------------------------------------------
def _to_3tuple(v):
    if isinstance(v, (tuple, list)):
        assert len(v) == 3
        return tuple(float(x) for x in v)
    return (float(v),) * 3


class MotionBlur3DPallas:
    def __init__(self, kernel_size, angle, direction, border_type="constant"):
        self.kernel_size = int(kernel_size)
        self.angle = _to_3tuple(angle)
        self.direction = float(direction)
        self.border_type = border_type
        # Static angle/direction -> build the tiny K^3 kernel once on host.
        # TODO(synk): per-sample tensor angle/direction ([B,3]/[B]) would need
        # batched kernels; only the static-scalar ctor path is implemented.
        self.kernel3d = get_motion_kernel3d(self.kernel_size, self.angle,
                                            self.direction)

    def __call__(self, image):
        return filter3d_pallas(image, self.kernel3d, self.border_type)


# ----------------------------------------------------------------------------
# Self-test
# ----------------------------------------------------------------------------
if __name__ == "__main__":
    key1, key2 = jax.random.split(jax.random.PRNGKey(0))

    # Test 1: K=3, 8 independent (b, c) volumes -> 8 pipelined grid steps,
    # no D tiling.
    x1 = jax.random.normal(key1, (2, 4, 8, 16, 16), dtype=jnp.float32)
    blur1 = MotionBlur3DPallas(kernel_size=3, angle=(35.0, 35.0, 35.0),
                               direction=0.5, border_type="constant")
    y1 = jax.jit(blur1)(x1)
    jax.block_until_ready(y1)
    r1 = _filter3d_dense_jax(x1, blur1.kernel3d, "constant")
    assert y1.shape == x1.shape
    assert jnp.allclose(y1, r1, atol=1e-5, rtol=1e-5)

    # Test 2: K=5, small batch, odd H/W -> exercises the D-tiled halo path.
    x2 = jax.random.normal(key2, (1, 2, 12, 10, 14), dtype=jnp.float32)
    blur2 = MotionBlur3DPallas(kernel_size=5, angle=(10.0, 30.0, 60.0),
                               direction=-0.3, border_type="constant")
    y2 = jax.jit(blur2)(x2)
    jax.block_until_ready(y2)
    r2 = _filter3d_dense_jax(x2, blur2.kernel3d, "constant")
    assert y2.shape == x2.shape
    assert jnp.allclose(y2, r2, atol=1e-5, rtol=1e-5)

    print("KERNEL_OK")
</pallas_src>

<mosaic_0001>
module attributes {stable_mosaic.version = 11 : i64} {
  func.func @_motion_conv_kernel(%arg0: i32, %arg1: i32, %arg2: memref<1x8x16x16xf32, #tpu.memory_space<vmem>>, %arg3: memref<1x8x16x16xf32, #tpu.memory_space<vmem>>, %arg4: memref<1x10x18x18xf32, #tpu.memory_space<vmem>>) attributes {dimension_semantics = [#tpu.dimension_semantics<parallel>, #tpu.dimension_semantics<parallel>], iteration_bounds = array<i64: 8, 1>, scalar_prefetch = 0 : i64, scratch_operands = 1 : i64, tpu.core_type = #tpu.core_type<tc>, window_params = [{transform_indices = @transform_0, window_bounds = array<i64: 1, 8, 16, 16>}, {transform_indices = @transform_1, window_bounds = array<i64: 1, 8, 16, 16>}]} {
    %cst = arith.constant 0.000000e+00 : f32
    %0 = vector.broadcast %cst : f32 to vector<1x10x18x18xf32>
    %c0 = arith.constant 0 : index
    %c0_0 = arith.constant 0 : index
    %c0_1 = arith.constant 0 : index
    %c0_2 = arith.constant 0 : index
    %1 = vector.load %arg4[%c0, %c0_0, %c0_1, %c0_2] : memref<1x10x18x18xf32, #tpu.memory_space<vmem>>, vector<1x10x18x18xf32>
    tpu.vector_store %arg4[%c0, %c0_0, %c0_1, %c0_2], %0 {strides = array<i32>} : memref<1x10x18x18xf32, #tpu.memory_space<vmem>>, vector<1x10x18x18xf32>,
    %c0_3 = arith.constant 0 : index
    %c0_4 = arith.constant 0 : index
    %c0_5 = arith.constant 0 : index
    %c0_6 = arith.constant 0 : index
    %2 = vector.load %arg2[%c0_3, %c0_4, %c0_5, %c0_6] : memref<1x8x16x16xf32, #tpu.memory_space<vmem>>, vector<1x8x16x16xf32>
    %c0_7 = arith.constant 0 : index
    %c1 = arith.constant 1 : index
    %c1_8 = arith.constant 1 : index
    %c1_9 = arith.constant 1 : index
    %3 = vector.load %arg4[%c0_7, %c1, %c1_8, %c1_9] : memref<1x10x18x18xf32, #tpu.memory_space<vmem>>, vector<1x8x16x16xf32>
    tpu.vector_store %arg4[%c0_7, %c1, %c1_8, %c1_9], %2 {strides = array<i32>} : memref<1x10x18x18xf32, #tpu.memory_space<vmem>>, vector<1x8x16x16xf32>,
    %c0_10 = arith.constant 0 : index
    %c0_11 = arith.constant 0 : index
    %c0_12 = arith.constant 0 : index
    %c0_13 = arith.constant 0 : index
    %4 = vector.load %arg4[%c0_10, %c0_11, %c0_12, %c0_13] : memref<1x10x18x18xf32, #tpu.memory_space<vmem>>, vector<1x10x16x16xf32>
    %5 = vector.extract_strided_slice %4 {offsets = [0, 1, 0, 0], sizes = [1, 8, 16, 16], strides = [1, 1, 1, 1]} : vector<1x10x16x16xf32> to vector<1x8x16x16xf32>
    %cst_14 = arith.constant 5.000000e-01 : f32
    %6 = vector.broadcast %cst_14 : f32 to vector<1x8x16x16xf32>
    %7 = arith.mulf %5, %6 : vector<1x8x16x16xf32>
    %c0_15 = arith.constant 0 : index
    %c0_16 = arith.constant 0 : index
    %c1_17 = arith.constant 1 : index
    %c1_18 = arith.constant 1 : index
    %8 = vector.load %arg4[%c0_15, %c0_16, %c1_17, %c1_18] : memref<1x10x18x18xf32, #tpu.memory_space<vmem>>, vector<1x10x16x16xf32>
    %9 = vector.extract_strided_slice %8 {offsets = [0, 1, 0, 0], sizes = [1, 8, 16, 16], strides = [1, 1, 1, 1]} : vector<1x10x16x16xf32> to vector<1x8x16x16xf32>
    %cst_19 = arith.constant 0.333333343 : f32
    %10 = vector.broadcast %cst_19 : f32 to vector<1x8x16x16xf32>
    %11 = arith.mulf %9, %10 : vector<1x8x16x16xf32>
    %12 = arith.addf %7, %11 : vector<1x8x16x16xf32>
    %c0_20 = arith.constant 0 : index
    %c0_21 = arith.constant 0 : index
    %c2 = arith.constant 2 : index
    %c2_22 = arith.constant 2 : index
    %13 = vector.load %arg4[%c0_20, %c0_21, %c2, %c2_22] : memref<1x10x18x18xf32, #tpu.memory_space<vmem>>, vector<1x10x16x16xf32>
    %14 = vector.extract_strided_slice %13 {offsets = [0, 1, 0, 0], sizes = [1, 8, 16, 16], strides = [1, 1, 1, 1]} : vector<1x10x16x16xf32> to vector<1x8x16x16xf32>
    %cst_23 = arith.constant 0.166666672 : f32
    %15 = vector.broadcast %cst_23 : f32 to vector<1x8x16x16xf32>
    %16 = arith.mulf %14, %15 : vector<1x8x16x16xf32>
    %17 = arith.addf %12, %16 : vector<1x8x16x16xf32>
    %c0_24 = arith.constant 0 : index
    %c0_25 = arith.constant 0 : index
    %c0_26 = arith.constant 0 : index
    %c0_27 = arith.constant 0 : index
    %18 = vector.load %arg3[%c0_24, %c0_25, %c0_26, %c0_27] : memref<1x8x16x16xf32, #tpu.memory_space<vmem>>, vector<1x8x16x16xf32>
    tpu.vector_store %arg3[%c0_24, %c0_25, %c0_26, %c0_27], %17 {strides = array<i32>} : memref<1x8x16x16xf32, #tpu.memory_space<vmem>>, vector<1x8x16x16xf32>,
    return
  }
  func.func @transform_0(%arg0: i32, %arg1: i32) -> (i32, i32, i32, i32) {
    %c0_i32 = arith.constant 0 : i32
    %c0_i32_0 = arith.constant 0 : i32
    %c0_i32_1 = arith.constant 0 : i32
    return %arg0, %arg1, %c0_i32, %c0_i32_0 : i32, i32, i32, i32
  }
  func.func @transform_1(%arg0: i32, %arg1: i32) -> (i32, i32, i32, i32) {
    %c0_i32 = arith.constant 0 : i32
    %c0_i32_0 = arith.constant 0 : i32
    %c0_i32_1 = arith.constant 0 : i32
    return %arg0, %arg1, %c0_i32, %c0_i32_0 : i32, i32, i32, i32
  }
}

</mosaic_0001>

<bundles_post_ra>
// kernel: _unnamed_function_.1
= control target key start
LH: loop header
LB: loop body
LE: loop exit
PB: predicated region body
PF: predicated region fallthrough
CT: control target
= control target key end

     0   :  { %6 = vsyncpa [#allocation4], 0  ;;  %s1207_s0 = inlined_call_operand.hbm [shape: f32[8,8,16,16], index: 0, kind: input, shape index: {}]   ;;  %s1208_s1 = inlined_call_operand.hbm [shape: f32[8,8,16,16], index: 1, kind: output, shape index: {}]  }
   0x1   :  { %8 = vsyncpa [#allocation4 + $0x1], 0 }
   0x2   :  { %9 = vsyncpa [#allocation5], 0 }
   0x3   :  { %11 = vsyncpa [#allocation5 + $0x1], 0  ;;  %s884_s6 = smov 0   ;;  %s886_s7 = smov 0  }
   0x4   :  { %s888_s8 = smov 0   ;;  %s890_s9 = smov 0  }
   0x5   :  { %s892_s10 = smov 0   ;;  %s894_s11 = smov 0  }
   0x6 LB: > { %s663_s12 = sadd.s32 4294967295, %s862_s11   ;;  %s664_s13 = sadd.s32 4294967294, %s862_s11   ;;  %s862_s11 = sphi %s894_s11, %s17_s11   ;;  %s858_s10 = sphi %s892_s10, %s1222_s10   ;;  %s854_s9 = sphi %s890_s9, %s1221_s9   ;;  %s850_s8 = sphi %s888_s8, %s1220_s8   ;;  %s846_s7 = sphi %s886_s7, %s1219_s7   ;;  %s842_s6 = sphi %s884_s6, %s1218_s6  }
   0x7   : > { %s29_s14 = sadd.s32 1, %s858_s10  ;;  %s38_s15 = sadd.s32 1, %s850_s8 }
   0x8   : > { %p31_p0 = scmp.ge.s32.totalorder %s29_s14, 8  ;;  %p45_p1 = scmp.ne.s32.totalorder %s850_s8, %s846_s7 }
   0x9   : > { %p46_p2 = scmp.eq.s32.totalorder %s862_s11, 0  ;;  %p51_p3 = scmp.ne.s32.totalorder %s846_s7, %s842_s6 }
   0xa   : > { %s1224_s14 = smov (%p31_p0, %s29_s14), 0  ;;  %p52_p5 = scmp.eq.s32.totalorder %s663_s12, 0 }
   0xb   : > { %p925_p4 = por %p46_p2, %p45_p1  ;;  %s33_s17 = ssub.s32 %s858_s10, %s1224_s14 }
   0xc   : > { %p77_p6 = scmp.eq.s32.totalorder %s663_s12, 7  ;;  %p36_p7 = scmp.eq.s32.totalorder %s33_s17, 0 }
   0xd   : > { %p931_p8 = por %p52_p5, %p51_p3  ;;  %p83_p10 = scmp.eq.s32.totalorder %s664_s13, 7 }
   0xe   : > { %p935_p9 = por %p77_p6, %p45_p1  ;;  %p692_p12 = scmp.lt.s32.totalorder %s862_s11, 8 }
   0xf   : > { %s940_s20 = scalar_select %p36_p7, %s850_s8, %s38_s15  }
  0x10   : > { %s1212_s19 = scalar_select %p935_p9, 1, 0 }
  0x11   : > { %p942_p11 = por %p83_p10, %p51_p3  ;;  %s103_s22 = sand.u32 1, %s850_s8  }
  0x12   : > { %s667_s23 = sshll.u32 %s103_s22, 7  ;;  %s678_s24 = sshll.u32 %s858_s10, 11 }
  0x13   : > { %s1213_s21 = scalar_select %p942_p11, 1, 0 }
  0x14   : > { %s952_s27 = scalar_lea.hbm %s1207_s0, %s678_s24  ;;  %s107_s28 = scalar_lea.vmem [#allocation3], %s667_s23 }
  0x15   : > { %s117_s29 = sshll.u32 %s107_s28, 4  ;;  %p958_p13 = pnand %p692_p12, %p925_p4  ;;  %s954_s29 = int_to_ptr.vmem [resolvable:$true] %s117_s29 }
  0x16   : > { %s963_s2 = scalar_lea.sflag [#allocation4], %s103_s22  ;;  %s750_s3 = scalar_lea.hbm %s952_s27, 2048 }
  0x17   : > { %p751_p1 = scmp.ne.s32.totalorder %s952_s27, %s750_s3  ;;  %p752_p2 = pneg %p958_p13 }
  0x18   : > { %s755_s12 = scalar_lea.hbm %s1207_s0, 16384  ;;  %p756_p4 = scmp.lt.u32.totalorder %s952_s27, %s1207_s0 }
  0x19   : > { %p753_p3 = pnand %p752_p2, %p751_p1  ;;  %p757_p6 = scmp.lt.u32.totalorder %s755_s12, %s750_s3 }
  0x1a   : > { %p759_p10 = scmp.lt.u32.totalorder %s750_s3, %s952_s27 }
  0x1b   : > { %p754_p5 = pneg %p753_p3  ;;  %p758_p7 = por %p757_p6, %p756_p4 }
  0x1d   : > { %p760_p12 = por %p759_p10, %p758_p7 }
  0x1f   : > { %p761_p0 = pnand %p760_p12, %p754_p5 }
  0x21   : > { %764 = shalt.err (!%p761_p0)
}
  0x22   : > { %s765_s16 = scalar_lea.vmem %s954_s29, 2048  ;;  %s864_s17 = smov [#allocation3]  }
  0x23   : > { %p766_p1 = scmp.ne.s32.totalorder %s954_s29, %s765_s16  ;;  %s770_s22 = sshll.u32 %s864_s17, 4  ;;  %s771_s22 = int_to_ptr.vmem [resolvable:$false] %s770_s22 }
  0x24   : > { %s772_s23 = scalar_lea.vmem %s771_s22, 4096  ;;  %p773_p9 = scmp.lt.s32.totalorder %s954_s29, %s771_s22 }
  0x25   : > { %p768_p3 = pnand %p766_p1, %p752_p2  ;;  %p774_p4 = scmp.lt.s32.totalorder %s772_s23, %s765_s16 }
  0x27   : > { %p769_p11 = pneg %p768_p3  ;;  %p775_p6 = por %p774_p4, %p773_p9 }
  0x29   : > { %p776_p7 = pnand %p775_p6, %p769_p11 }
  0x2b   : > { %779 = shalt.err (!%p776_p7)
}
  0x2c   : > { %s865_s24 = smov 128   ;;  %s866_s25 = smov 8  }
  0x2d   : > { %687 = dma.hbm_to_vmem [thread:$0]  (!%p958_p13), %s952_s27, 2048, %s954_s29, %s963_s2, %s865_s24, %s865_s24, %s866_s25  }
  0x2e   : > { %p125_p0 = scmp.lt.s32.totalorder %s862_s11, 9  ;;  %p1215_p2 = scmp.ge.s32.totalorder %s862_s11, 1 }
  0x30   : > { %p126_p5 = pnand %p1215_p2, %p125_p0 }
  0x31   : > { %s995_s26 = sand.u32 (!%p126_p5), 1, %s846_s7  }
  0x32   : > { %129 = sbr.rel (%p126_p5) target bundleno = 381 (0x17d), region = 24  ;;  %s671_s28 = sshll.u32 (!%p126_p5), %s995_s26, 7 }
  0x33   : > { %s132_s3 = scalar_lea.sflag (!%p126_p5), [#allocation4], %s995_s26  ;;  %s1001_s4 = scalar_lea.vmem (!%p126_p5), [#allocation3], %s671_s28 }
  0x39   : > { %833 = dma.done.wait (%p931_p8), %s132_s3, 2048  }
  0x3a   : > { %835 = vsyncadd (%p931_p8), %s132_s3, 4294965248  ;;  %vm156_vm0 = vcmask 146432   ;;  %vm159_vm1 = vcmask 140288   ;;  %v867_v0 = vmov 0.0   ;;  %v190_v1 = vld [vmem:[%s1001_s4 + $0x10] sm:$0xff]  ;;  %v188_v2 = vld [vmem:[%s1001_s4] sm:$0xff] }
  0x3b   : > { %161 = vst.msk [vmem:[#allocation2 + $0x18] sm:$0xff] %vm156_vm0, %v867_v0  ;;  %162 = vst.msk [vmem:[#allocation2 + $0x20] sm:$0xff] %vm156_vm0, %v867_v0  ;;  %s868_s18 = smov 1   ;;  %v191_v3 = vld [vmem:[%s1001_s4 + $0x18] sm:$0xff]  ;;  %v189_v4 = vld [vmem:[%s1001_s4 + $0x8] sm:$0xff]  ;;  %vm269_vm2 = vcmask 138248  }
  0x3c   : > { %164 = vst.msk [vmem:[#allocation2 + $0x30] sm:$0xff] %vm156_vm0, %v867_v0  ;;  %165 = vst.msk [vmem:[#allocation2 + $0x38] sm:$0xff] %vm156_vm0, %v867_v0  ;;  %224 = vrot.lane.b32.xlu1 %v190_v1, %s868_s18  ;;  %220 = vrot.lane.b32.xlu0 %v188_v2, %s868_s18  ;;  %v192_v5 = vld [vmem:[%s1001_s4 + $0x20] sm:$0xff]  ;;  %v193_v6 = vld [vmem:[%s1001_s4 + $0x28] sm:$0xff]  ;;  %s869_s27 = smov 127   ;;  %s870_s29 = smov 126  }
  0x3d   : > { %167 = vst.msk [vmem:[#allocation2 + $0x48] sm:$0xff] %vm156_vm0, %v867_v0  ;;  %168 = vst.msk [vmem:[#allocation2 + $0x50] sm:$0xff] %vm156_vm0, %v867_v0  ;;  %v194_v7 = vld [vmem:[%s1001_s4 + $0x30] sm:$0xff]  ;;  %v195_v8 = vld [vmem:[%s1001_s4 + $0x38] sm:$0xff]  ;;  %vm542_vm3 = vcmask 130048   ;;  %s1111_s30 = scalar_lea.vmem [#allocation6], %s671_s28 }
  0x3e   : > { %170 = vst.msk [vmem:[#allocation2 + $0x60] sm:$0xff] %vm156_vm0, %v867_v0  ;;  %171 = vst.msk [vmem:[#allocation2 + $0x68] sm:$0xff] %vm156_vm0, %v867_v0  ;;  %v196_v9 = vld [vmem:[%s1001_s4 + $0x40] sm:$0xff]  ;;  %v197_v10 = vld [vmem:[%s1001_s4 + $0x48] sm:$0xff]  ;;  %s679_s2 = sshll.u32 %s854_s9, 11  ;;  %s576_s5 = sshll.u32 %s1111_s30, 4  ;;  %s1157_s5 = int_to_ptr.vmem [resolvable:$true] %s576_s5 }
  0x3f   : > { %173 = vst.msk [vmem:[#allocation2 + $0x78] sm:$0xff] %vm156_vm0, %v867_v0  ;;  %174 = vst.msk [vmem:[#allocation2 + $0x80] sm:$0xff] %vm156_vm0, %v867_v0  ;;  %v198_v11 = vld [vmem:[%s1001_s4 + $0x50] sm:$0xff]  ;;  %v199_v12 = vld [vmem:[%s1001_s4 + $0x58] sm:$0xff]  ;;  %s1155_s15 = scalar_lea.hbm %s1208_s1, %s679_s2  ;;  %s560_s9 = scalar_lea.sflag [#allocation5], %s995_s26 }
  0x40   : > { %176 = vst.msk [vmem:[#allocation2 + $0x90] sm:$0xff] %vm156_vm0, %v867_v0  ;;  %177 = vst.msk [vmem:[#allocation2 + $0x98] sm:$0xff] %vm156_vm0, %v867_v0  ;;  %226 = vrot.lane.b32.xlu1 %v191_v3, %s868_s18  ;;  %222 = vrot.lane.b32.xlu0 %v189_v4, %s868_s18  ;;  %v200_v13 = vld [vmem:[%s1001_s4 + $0x60] sm:$0xff]  ;;  %v201_v14 = vld [vmem:[%s1001_s4 + $0x68] sm:$0xff]  ;;  %s780_s16 = scalar_lea.vmem %s1157_s5, 2048  ;;  %p1216_p9 = scmp.ne.s32.totalorder %s1212_s19, 0 }
  0x41   : > { %179 = vst.msk [vmem:[#allocation2 + $0xa8] sm:$0xff] %vm156_vm0, %v867_v0  ;;  %180 = vst.msk [vmem:[#allocation2 + $0xb0] sm:$0xff] %vm156_vm0, %v867_v0  ;;  %v202_v15 = vld [vmem:[%s1001_s4 + $0x70] sm:$0xff]  ;;  %v203_v16 = vld [vmem:[%s1001_s4 + $0x78] sm:$0xff]  ;;  %p781_p8 = scmp.ne.s32.totalorder %s1157_s5, %s780_s16  ;;  %s871_s17 = smov [#allocation6]  }
  0x42   : > { %182 = vst.msk [vmem:[#allocation2 + $0xc0] sm:$0xff] %vm156_vm0, %v867_v0  ;;  %183 = vst.msk [vmem:[#allocation2 + $0xc8] sm:$0xff] %vm156_vm0, %v867_v0  ;;  %s784_s22 = sshll.u32 %s871_s17, 4  ;;  %s785_s22 = int_to_ptr.vmem [resolvable:$false] %s784_s22 }
  0x43   : > { %166 = vst.msk [vmem:[#allocation2 + $0x40] sm:$0x3] %vm159_vm1, %v867_v0  ;;  %163 = vst.msk [vmem:[#allocation2 + $0x28] sm:$0x3] %vm159_vm1, %v867_v0  ;;  %p782_p11 = pnand %p781_p8, %p1216_p9  ;;  %s786_s23 = scalar_lea.vmem %s785_s22, 4096 }
  0x44   : > { %169 = vst.msk [vmem:[#allocation2 + $0x58] sm:$0x3] %vm159_vm1, %v867_v0  ;;  %172 = vst.msk [vmem:[#allocation2 + $0x70] sm:$0x3] %vm159_vm1, %v867_v0  ;;  %228 = vrot.lane.b32.xlu0 %v192_v5, %s868_s18  ;;  %230 = vrot.lane.b32.xlu1 %v193_v6, %s868_s18  ;;  %p787_p10 = scmp.lt.s32.totalorder %s1157_s5, %s785_s22  ;;  %p788_p12 = scmp.lt.s32.totalorder %s786_s23, %s780_s16 }
  0x45   : > { %175 = vst.msk [vmem:[#allocation2 + $0x88] sm:$0x3] %vm159_vm1, %v867_v0  ;;  %178 = vst.msk [vmem:[#allocation2 + $0xa0] sm:$0x3] %vm159_vm1, %v867_v0  ;;  %p783_p13 = pneg %p782_p11 }
  0x46   : > { %181 = vst.msk [vmem:[#allocation2 + $0xb8] sm:$0x3] %vm159_vm1, %v867_v0  ;;  %184 = vst.msk [vmem:[#allocation2 + $0xd0] sm:$0x3] %vm159_vm1, %v867_v0  ;;  %p789_p1 = por %p788_p12, %p787_p10 }
  0x48   : > { %232 = vrot.lane.b32.xlu0 %v194_v7, %s868_s18  ;;  %234 = vrot.lane.b32.xlu1 %v195_v8, %s868_s18  ;;  %p790_p3 = pnand %p789_p1, %p783_p13 }
  0x4c   : > { %236 = vrot.lane.b32.xlu0 %v196_v9, %s868_s18  ;;  %238 = vrot.lane.b32.xlu1 %v197_v10, %s868_s18 }
  0x50   : > { %240 = vrot.lane.b32.xlu0 %v198_v11, %s868_s18  ;;  %242 = vrot.lane.b32.xlu1 %v199_v12, %s868_s18 }
  0x54   : > { %244 = vrot.lane.b32.xlu0 %v200_v13, %s868_s18  ;;  %246 = vrot.lane.b32.xlu1 %v201_v14, %s868_s18 }
  0x58   : > { %248 = vrot.lane.b32.xlu0 %v202_v15, %s868_s18  ;;  %250 = vrot.lane.b32.xlu1 %v203_v16, %s868_s18 }
  0xae   : > { %v225_v17 = vpop.permute.xlu1 %224  ;;  %v221_v18 = vpop.permute.xlu0 %220 }
  0xaf   : > { %272 = vst.msk [vmem:[#allocation2 + $0x31] sm:$0xff] %vm269_vm2, %v225_v17  ;;  %270 = vst.msk [vmem:[#allocation2 + $0x19] sm:$0xff] %vm269_vm2, %v221_v18 }
  0xb2   : > { %v227_v19 = vpop.permute.xlu1 %226  ;;  %v223_v20 = vpop.permute.xlu0 %222 }
  0xb3   : > { %273 = vst.msk [vmem:[#allocation2 + $0x39] sm:$0xff] %vm269_vm2, %v227_v19  ;;  %271 = vst.msk [vmem:[#allocation2 + $0x21] sm:$0xff] %vm269_vm2, %v223_v20 }
  0xb6   : > { %v229_v21 = vpop.permute.xlu0 %228  ;;  %v318_v22 = vld [vmem:[#allocation2 + $0x19] sm:$0xff]  ;;  %v231_v23 = vpop.permute.xlu1 %230  ;;  %v320_v24 = vld [vmem:[#allocation2 + $0x31] sm:$0xff] }
  0xb7   : > { %274 = vst.msk [vmem:[#allocation2 + $0x49] sm:$0xff] %vm269_vm2, %v229_v21  ;;  %v334_v25 = vmul.f32 0.33333334, %v318_v22  ;;  %275 = vst.msk [vmem:[#allocation2 + $0x51] sm:$0xff] %vm269_vm2, %v231_v23  ;;  %v336_v26 = vmul.f32 0.33333334, %v320_v24 }
  0xb9   : > { %366 = vrot.lane.b32.xlu0 %v334_v25, %s869_s27 }
  0xba   : > { %v233_v27 = vpop.permute.xlu0 %232  ;;  %v319_v28 = vld [vmem:[#allocation2 + $0x21] sm:$0xff]  ;;  %v235_v29 = vpop.permute.xlu1 %234  ;;  %v321_v30 = vld [vmem:[#allocation2 + $0x39] sm:$0xff] }
  0xbb   : > { %276 = vst.msk [vmem:[#allocation2 + $0x61] sm:$0xff] %vm269_vm2, %v233_v27  ;;  %v335_v31 = vmul.f32 0.33333334, %v319_v28  ;;  %277 = vst.msk [vmem:[#allocation2 + $0x69] sm:$0xff] %vm269_vm2, %v235_v29  ;;  %v337_v32 = vmul.f32 0.33333334, %v321_v30 }
  0xbc   : > { %v430_v0 = vld [vmem:[#allocation2 + $0x1a] sm:$0xff]  ;;  %v431_v3 = vld [vmem:[#allocation2 + $0x22] sm:$0xff]  ;;  %v432_v4 = vld [vmem:[#allocation2 + $0x32] sm:$0xff] }
  0xbd   : > { %368 = vrot.lane.b32.xlu1 %v335_v31, %s869_s27  ;;  %370 = vrot.lane.b32.xlu0 %v336_v26, %s869_s27  ;;  %v446_v2 = vmul.f32 0.16666667, %v430_v0  ;;  %v447_v5 = vmul.f32 0.16666667, %v431_v3  ;;  %v448_v6 = vmul.f32 0.16666667, %v432_v4 }
  0xbe   : > { %v237_v33 = vpop.permute.xlu0 %236  ;;  %v322_v34 = vld [vmem:[#allocation2 + $0x49] sm:$0xff]  ;;  %v239_v35 = vpop.permute.xlu1 %238  ;;  %v323_v36 = vld [vmem:[#allocation2 + $0x51] sm:$0xff]  ;;  %v433_v7 = vld [vmem:[#allocation2 + $0x3a] sm:$0xff] }
  0xbf   : > { %278 = vst.msk [vmem:[#allocation2 + $0x79] sm:$0xff] %vm269_vm2, %v237_v33  ;;  %v338_v37 = vmul.f32 0.33333334, %v322_v34  ;;  %279 = vst.msk [vmem:[#allocation2 + $0x81] sm:$0xff] %vm269_vm2, %v239_v35  ;;  %v339_v38 = vmul.f32 0.33333334, %v323_v36 }
  0xc0   : > { %v434_v8 = vld [vmem:[#allocation2 + $0x4a] sm:$0xff]  ;;  %v449_v9 = vmul.f32 0.16666667, %v433_v7  ;;  %v435_v11 = vld [vmem:[#allocation2 + $0x52] sm:$0xff] }
  0xc1   : > { %372 = vrot.lane.b32.xlu1 %v337_v32, %s869_s27  ;;  %374 = vrot.lane.b32.xlu0 %v338_v37, %s869_s27  ;;  %v450_v10 = vmul.f32 0.16666667, %v434_v8  ;;  %v451_v13 = vmul.f32 0.16666667, %v435_v11  ;;  %v291_v4 = vld [vmem:[#allocation2 + $0x50] sm:$0xff] }
  0xc2   : > { %v241_v39 = vpop.permute.xlu0 %240  ;;  %v324_v40 = vld [vmem:[#allocation2 + $0x61] sm:$0xff]  ;;  %v243_v41 = vpop.permute.xlu1 %242  ;;  %v325_v42 = vld [vmem:[#allocation2 + $0x69] sm:$0xff] }
  0xc3   : > { %280 = vst.msk [vmem:[#allocation2 + $0x91] sm:$0xff] %vm269_vm2, %v241_v39  ;;  %v340_v43 = vmul.f32 0.33333334, %v324_v40  ;;  %281 = vst.msk [vmem:[#allocation2 + $0x99] sm:$0xff] %vm269_vm2, %v243_v41  ;;  %v341_v44 = vmul.f32 0.33333334, %v325_v42 }
  0xc4   : > { %v436_v12 = vld [vmem:[#allocation2 + $0x62] sm:$0xff]  ;;  %v437_v15 = vld [vmem:[#allocation2 + $0x6a] sm:$0xff] }
  0xc5   : > { %376 = vrot.lane.b32.xlu1 %v339_v38, %s869_s27  ;;  %378 = vrot.lane.b32.xlu0 %v340_v43, %s869_s27  ;;  %v452_v14 = vmul.f32 0.16666667, %v436_v12  ;;  %v453_v17 = vmul.f32 0.16666667, %v437_v15 }
  0xc6   : > { %v245_v45 = vpop.permute.xlu0 %244  ;;  %v326_v46 = vld [vmem:[#allocation2 + $0x79] sm:$0xff]  ;;  %v247_v47 = vpop.permute.xlu1 %246  ;;  %v327_v48 = vld [vmem:[#allocation2 + $0x81] sm:$0xff] }
  0xc7   : > { %282 = vst.msk [vmem:[#allocation2 + $0xa9] sm:$0xff] %vm269_vm2, %v245_v45  ;;  %v342_v49 = vmul.f32 0.33333334, %v326_v46  ;;  %283 = vst.msk [vmem:[#allocation2 + $0xb1] sm:$0xff] %vm269_vm2, %v247_v47  ;;  %v343_v50 = vmul.f32 0.33333334, %v327_v48 }
  0xc8   : > { %v438_v16 = vld [vmem:[#allocation2 + $0x7a] sm:$0xff]  ;;  %v439_v19 = vld [vmem:[#allocation2 + $0x82] sm:$0xff] }
  0xc9   : > { %380 = vrot.lane.b32.xlu1 %v341_v44, %s869_s27  ;;  %382 = vrot.lane.b32.xlu0 %v342_v49, %s869_s27  ;;  %v454_v18 = vmul.f32 0.16666667, %v438_v16  ;;  %v455_v21 = vmul.f32 0.16666667, %v439_v19  ;;  %v286_v46 = vld [vmem:[#allocation2 + $0x18] sm:$0xff] }
  0xca   : > { %v249_v51 = vpop.permute.xlu0 %248  ;;  %v328_v52 = vld [vmem:[#allocation2 + $0x91] sm:$0xff]  ;;  %v251_v53 = vpop.permute.xlu1 %250  ;;  %v329_v54 = vld [vmem:[#allocation2 + $0x99] sm:$0xff]  ;;  %v302_v49 = vmul.f32 0.5, %v286_v46 }
  0xcb   : > { %284 = vst.msk [vmem:[#allocation2 + $0xc1] sm:$0xff] %vm269_vm2, %v249_v51  ;;  %v344_v55 = vmul.f32 0.33333334, %v328_v52  ;;  %285 = vst.msk [vmem:[#allocation2 + $0xc9] sm:$0xff] %vm269_vm2, %v251_v53  ;;  %v345_v56 = vmul.f32 0.33333334, %v329_v54 }
  0xcc   : > { %v440_v20 = vld [vmem:[#allocation2 + $0x92] sm:$0xff]  ;;  %v441_v23 = vld [vmem:[#allocation2 + $0x9a] sm:$0xff] }
  0xcd   : > { %384 = vrot.lane.b32.xlu1 %v343_v50, %s869_s27  ;;  %386 = vrot.lane.b32.xlu0 %v344_v55, %s869_s27  ;;  %v456_v22 = vmul.f32 0.16666667, %v440_v20  ;;  %v457_v25 = vmul.f32 0.16666667, %v441_v23  ;;  %v287_v50 = vld [vmem:[#allocation2 + $0x20] sm:$0xff]  ;;  %v288_v51 = vld [vmem:[#allocation2 + $0x30] sm:$0xff] }
  0xce   : > { %v330_v57 = vld [vmem:[#allocation2 + $0xa9] sm:$0xff]  ;;  %v331_v58 = vld [vmem:[#allocation2 + $0xb1] sm:$0xff]  ;;  %v303_v55 = vmul.f32 0.5, %v287_v50 }
  0xcf   : > { %v346_v59 = vmul.f32 0.33333334, %v330_v57  ;;  %v347_v60 = vmul.f32 0.33333334, %v331_v58  ;;  %v442_v24 = vld [vmem:[#allocation2 + $0xaa] sm:$0xff]  ;;  %v443_v27 = vld [vmem:[#allocation2 + $0xb2] sm:$0xff] }
  0xd0   : > { %v458_v26 = vmul.f32 0.16666667, %v442_v24  ;;  %v459_v29 = vmul.f32 0.16666667, %v443_v27  ;;  %v289_v58 = vld [vmem:[#allocation2 + $0x38] sm:$0xff]  ;;  %v295_v24 = vld [vmem:[#allocation2 + $0x80] sm:$0xff] }
  0xd1   : > { %388 = vrot.lane.b32.xlu1 %v345_v56, %s869_s27  ;;  %390 = vrot.lane.b32.xlu0 %v346_v59, %s869_s27  ;;  %v304_v56 = vmul.f32 0.5, %v288_v51  ;;  %v290_v59 = vld [vmem:[#allocation2 + $0x48] sm:$0xff]  ;;  %v305_v0 = vmul.f32 0.5, %v289_v58  ;;  %v294_v15 = vld [vmem:[#allocation2 + $0x78] sm:$0xff]  ;;  %v299_v50 = vld [vmem:[#allocation2 + $0xb0] sm:$0xff] }
  0xd2   : > { %v332_v61 = vld [vmem:[#allocation2 + $0xc1] sm:$0xff]  ;;  %v333_v62 = vld [vmem:[#allocation2 + $0xc9] sm:$0xff] }
  0xd3   : > { %v348_v63 = vmul.f32 0.33333334, %v332_v61  ;;  %v349_v1 = vmul.f32 0.33333334, %v333_v62  ;;  %v444_v28 = vld [vmem:[#allocation2 + $0xc2] sm:$0xff]  ;;  %v445_v31 = vld [vmem:[#allocation2 + $0xca] sm:$0xff] }
  0xd4   : > { %v460_v30 = vmul.f32 0.16666667, %v444_v28  ;;  %v461_v32 = vmul.f32 0.16666667, %v445_v31  ;;  %v300_v51 = vld [vmem:[#allocation2 + $0xc0] sm:$0xff] }
  0xd5   : > { %392 = vrot.lane.b32.xlu1 %v347_v60, %s869_s27  ;;  %394 = vrot.lane.b32.xlu0 %v348_v63, %s869_s27 }
  0xd9   : > { %396 = vrot.lane.b32.xlu1 %v349_v1, %s869_s27  ;;  %478 = vrot.lane.b32.xlu0 %v446_v2, %s870_s29  ;;  %v306_v1 = vmul.f32 0.5, %v290_v59  ;;  %v301_v59 = vld [vmem:[#allocation2 + $0xc8] sm:$0xff] }
  0xdd   : > { %480 = vrot.lane.b32.xlu1 %v447_v5, %s870_s29  ;;  %482 = vrot.lane.b32.xlu0 %v448_v6, %s870_s29  ;;  %v292_v5 = vld [vmem:[#allocation2 + $0x60] sm:$0xff] }
  0xde   : > { %v308_v11 = vmul.f32 0.5, %v292_v5 }
  0xe1   : > { %484 = vrot.lane.b32.xlu1 %v449_v9, %s870_s29  ;;  %486 = vrot.lane.b32.xlu0 %v450_v10, %s870_s29  ;;  %v307_v10 = vmul.f32 0.5, %v291_v4 }
  0xe5   : > { %488 = vrot.lane.b32.xlu1 %v451_v13, %s870_s29  ;;  %490 = vrot.lane.b32.xlu0 %v452_v14, %s870_s29  ;;  %v293_v14 = vld [vmem:[#allocation2 + $0x68] sm:$0xff] }
  0xe6   : > { %v309_v20 = vmul.f32 0.5, %v293_v14 }
  0xe9   : > { %492 = vrot.lane.b32.xlu1 %v453_v17, %s870_s29  ;;  %494 = vrot.lane.b32.xlu0 %v454_v18, %s870_s29 }
  0xed   : > { %496 = vrot.lane.b32.xlu1 %v455_v21, %s870_s29  ;;  %498 = vrot.lane.b32.xlu0 %v456_v22, %s870_s29  ;;  %v310_v21 = vmul.f32 0.5, %v294_v15 }
  0xf1   : > { %500 = vrot.lane.b32.xlu1 %v457_v25, %s870_s29  ;;  %502 = vrot.lane.b32.xlu0 %v458_v26, %s870_s29  ;;  %v296_v25 = vld [vmem:[#allocation2 + $0x90] sm:$0xff] }
  0xf2   : > { %v312_v31 = vmul.f32 0.5, %v296_v25 }
  0xf5   : > { %504 = vrot.lane.b32.xlu1 %v459_v29, %s870_s29  ;;  %506 = vrot.lane.b32.xlu0 %v460_v30, %s870_s29  ;;  %v311_v30 = vmul.f32 0.5, %v295_v24 }
  0xf9   : > { %508 = vrot.lane.b32.xlu1 %v461_v32, %s870_s29 }
 0x12b   : > { %v367_v33 = vpop.permute.xlu0 %366 }
 0x12c   : > { %v414_v52 = vadd.f32 %v367_v33, %v302_v49 }
 0x12f   : > { %v369_v34 = vpop.permute.xlu1 %368  ;;  %v371_v35 = vpop.permute.xlu0 %370 }
 0x130   : > { %v415_v60 = vadd.f32 %v369_v34, %v303_v55  ;;  %v416_v61 = vadd.f32 %v371_v35, %v304_v56  ;;  %v297_v34 = vld [vmem:[#allocation2 + $0x98] sm:$0xff]  ;;  %v298_v35 = vld [vmem:[#allocation2 + $0xa8] sm:$0xff]  ;;  %v315_v55 = vmul.f32 0.5, %v299_v50  ;;  %v316_v56 = vmul.f32 0.5, %v300_v51 }
 0x133   : > { %v373_v36 = vpop.permute.xlu1 %372  ;;  %v375_v37 = vpop.permute.xlu0 %374 }
 0x134   : > { %v417_v6 = vadd.f32 %v373_v36, %v305_v0  ;;  %v418_v7 = vadd.f32 %v375_v37, %v306_v1 }
 0x137   : > { %v377_v38 = vpop.permute.xlu1 %376  ;;  %v379_v39 = vpop.permute.xlu0 %378 }
 0x138   : > { %v419_v16 = vadd.f32 %v377_v38, %v307_v10  ;;  %v420_v17 = vadd.f32 %v379_v39, %v308_v11 }
 0x13b   : > { %v381_v40 = vpop.permute.xlu1 %380  ;;  %v383_v41 = vpop.permute.xlu0 %382 }
 0x13c   : > { %v421_v26 = vadd.f32 %v381_v40, %v309_v20  ;;  %v422_v27 = vadd.f32 %v383_v41, %v310_v21  ;;  %v313_v40 = vmul.f32 0.5, %v297_v34  ;;  %v314_v41 = vmul.f32 0.5, %v298_v35 }
 0x13f   : > { %v1095_v42 = vpop.permute.xlu1 %384  ;;  %v1097_v43 = vpop.permute.xlu0 %386 }
 0x140   : > { %v423_v36 = vadd.f32 %v1095_v42, %v311_v30  ;;  %v424_v37 = vadd.f32 %v1097_v43, %v312_v31 }
 0x143   : > { %v1099_v44 = vpop.permute.xlu1 %388  ;;  %v1101_v45 = vpop.permute.xlu0 %390 }
 0x144   : > { %v426_v42 = vadd.f32 %v1101_v45, %v314_v41 }
 0x147   : > { %v1103_v47 = vpop.permute.xlu1 %392  ;;  %v1105_v48 = vpop.permute.xlu0 %394 }
 0x14b   : > { %v1107_v53 = vpop.permute.xlu1 %396  ;;  %v479_v54 = vpop.permute.xlu0 %478 }
 0x14c   : > { %v526_v57 = vadd.f32 %v479_v54, %v414_v52  ;;  %v425_v52 = vadd.f32 %v1099_v44, %v313_v40  ;;  %v428_v44 = vadd.f32 %v1105_v48, %v316_v56 }
 0x14e   : > { %543 = vst.msk [vmem:[%s1111_s30] sm:$0xff] %vm542_vm3, %v526_v57 }
 0x14f   : > { %v481_v62 = vpop.permute.xlu1 %480  ;;  %v483_v63 = vpop.permute.xlu0 %482 }
 0x150   : > { %v527_v2 = vadd.f32 %v481_v62, %v415_v60  ;;  %v528_v3 = vadd.f32 %v483_v63, %v416_v61  ;;  %v427_v60 = vadd.f32 %v1103_v47, %v315_v55  ;;  %v317_v62 = vmul.f32 0.5, %v301_v59 }
 0x152   : > { %544 = vst.msk [vmem:[%s1111_s30 + $0x8] sm:$0xff] %vm542_vm3, %v527_v2  ;;  %545 = vst.msk [vmem:[%s1111_s30 + $0x10] sm:$0xff] %vm542_vm3, %v528_v3  ;;  %v429_v1 = vadd.f32 %v1107_v53, %v317_v62 }
 0x153   : > { %v485_v8 = vpop.permute.xlu1 %484  ;;  %v487_v9 = vpop.permute.xlu0 %486 }
 0x154   : > { %v529_v12 = vadd.f32 %v485_v8, %v417_v6  ;;  %v530_v13 = vadd.f32 %v487_v9, %v418_v7 }
 0x156   : > { %546 = vst.msk [vmem:[%s1111_s30 + $0x18] sm:$0xff] %vm542_vm3, %v529_v12  ;;  %547 = vst.msk [vmem:[%s1111_s30 + $0x20] sm:$0xff] %vm542_vm3, %v530_v13 }
 0x157   : > { %v489_v18 = vpop.permute.xlu1 %488  ;;  %v491_v19 = vpop.permute.xlu0 %490 }
 0x158   : > { %v531_v22 = vadd.f32 %v489_v18, %v419_v16  ;;  %v532_v23 = vadd.f32 %v491_v19, %v420_v17 }
 0x15a   : > { %548 = vst.msk [vmem:[%s1111_s30 + $0x28] sm:$0xff] %vm542_vm3, %v531_v22  ;;  %549 = vst.msk [vmem:[%s1111_s30 + $0x30] sm:$0xff] %vm542_vm3, %v532_v23 }
 0x15b   : > { %v493_v28 = vpop.permute.xlu1 %492  ;;  %v495_v29 = vpop.permute.xlu0 %494 }
 0x15c   : > { %v533_v32 = vadd.f32 %v493_v28, %v421_v26  ;;  %v534_v33 = vadd.f32 %v495_v29, %v422_v27 }
 0x15e   : > { %550 = vst.msk [vmem:[%s1111_s30 + $0x38] sm:$0xff] %vm542_vm3, %v533_v32  ;;  %551 = vst.msk [vmem:[%s1111_s30 + $0x40] sm:$0xff] %vm542_vm3, %v534_v33 }
 0x15f   : > { %v497_v38 = vpop.permute.xlu1 %496  ;;  %v499_v39 = vpop.permute.xlu0 %498 }
 0x160   : > { %v535_v46 = vadd.f32 %v497_v38, %v423_v36  ;;  %v536_v49 = vadd.f32 %v499_v39, %v424_v37 }
 0x162   : > { %552 = vst.msk [vmem:[%s1111_s30 + $0x48] sm:$0xff] %vm542_vm3, %v535_v46  ;;  %553 = vst.msk [vmem:[%s1111_s30 + $0x50] sm:$0xff] %vm542_vm3, %v536_v49 }
 0x163   : > { %v501_v43 = vpop.permute.xlu1 %500  ;;  %v503_v54 = vpop.permute.xlu0 %502 }
 0x164   : > { %v537_v57 = vadd.f32 %v501_v43, %v425_v52  ;;  %v538_v58 = vadd.f32 %v503_v54, %v426_v42 }
 0x166   : > { %554 = vst.msk [vmem:[%s1111_s30 + $0x58] sm:$0xff] %vm542_vm3, %v537_v57  ;;  %555 = vst.msk [vmem:[%s1111_s30 + $0x60] sm:$0xff] %vm542_vm3, %v538_v58 }
 0x167   : > { %v505_v45 = vpop.permute.xlu1 %504  ;;  %v507_v61 = vpop.permute.xlu0 %506 }
 0x168   : > { %v539_v63 = vadd.f32 %v505_v45, %v427_v60  ;;  %v540_v0 = vadd.f32 %v507_v61, %v428_v44 }
 0x16a   : > { %556 = vst.msk [vmem:[%s1111_s30 + $0x68] sm:$0xff] %vm542_vm3, %v539_v63  ;;  %557 = vst.msk [vmem:[%s1111_s30 + $0x70] sm:$0xff] %vm542_vm3, %v540_v0 }
 0x16b   : > { %v509_v47 = vpop.permute.xlu1 %508 }
 0x16c   : > { %v541_v48 = vadd.f32 %v509_v47, %v429_v1 }
 0x16e   : > { %558 = vst.msk [vmem:[%s1111_s30 + $0x78] sm:$0xff] %vm542_vm3, %v541_v48 }
 0x16f   : > { %793 = shalt.err (!%p790_p3)
}
 0x170   : > { %s794_s24 = scalar_lea.hbm %s1155_s15, 2048  ;;  %s798_s3 = scalar_lea.hbm %s1208_s1, 16384 }
 0x171   : > { %p795_p4 = scmp.ne.s32.totalorder %s1155_s15, %s794_s24  ;;  %p799_p0 = scmp.lt.u32.totalorder %s1155_s15, %s1208_s1 }
 0x172   : > { %p800_p2 = scmp.lt.u32.totalorder %s798_s3, %s794_s24  ;;  %p802_p8 = scmp.lt.u32.totalorder %s794_s24, %s1155_s15 }
 0x173   : > { %p796_p6 = pnand %p795_p4, %p1216_p9 }
 0x174   : > { %p801_p5 = por %p800_p2, %p799_p0 }
 0x175   : > { %p797_p7 = pneg %p796_p6 }
 0x176   : > { %p803_p11 = por %p802_p8, %p801_p5 }
 0x178   : > { %p804_p13 = pnand %p803_p11, %p797_p7 }
 0x17a   : > { %807 = shalt.err (!%p804_p13)
}
 0x17b   : > { %s872_s27 = smov 128   ;;  %s873_s29 = smov 8  }
 0x17c   : > { %682 = dma.vmem_to_hbm [thread:$0]  (%p1216_p9), %s1157_s5, 2048, %s1155_s15, %s560_s9, %s872_s27, %s872_s27, %s873_s29  }
 0x17d PF: > { %p693_p10 = scmp.ge.s32.totalorder %s862_s11, 2  ;;  %s591_s30 = sand.u32 1, %s842_s6  }
 0x17e   : > { %p1217_p12 = scmp.ne.s32.totalorder %s1213_s21, 0  ;;  %s592_s2 = scalar_lea.sflag [#allocation5], %s591_s30 }
 0x180   : > { %p689_p1 = pnand %p693_p10, %p1217_p12 }
 0x182   : > { %837 = dma.done.wait (!%p689_p1), %s592_s2, 2048  }
 0x183   : > { %839 = vsyncadd (!%p689_p1), %s592_s2, 4294965248  ;;  %s17_s11 = sadd.s32 1, %s862_s11   ;;  %s1218_s6 = smov %s846_s7 }
 0x184   : > { %p14_p3 = scmp.ge.s32.totalorder %s17_s11, 10   ;;  %s1219_s7 = smov %s850_s8 }
 0x185   : > { %s1220_s8 = smov %s940_s20  ;;  %s1221_s9 = smov %s858_s10 }
 0x186   : > { %s1222_s10 = smov %s1224_s14  ;;  %16 = sbr.rel (!%p14_p3) target bundleno = 6 (0x6), region = 70 }
 0x18d   :  { %597 = vsyncpa [#allocation4], 1 }
 0x18e   :  { %599 = vsyncpa [#allocation4 + $0x1], 1 }
 0x18f   :  { %600 = vsyncpa [#allocation5], 1 }
 0x190   :  { %602 = vsyncpa [#allocation5 + $0x1], 1 }

</bundles_post_ra>
